<compile_context>
chip_gen: v7x
topology: tpu7x:2x2x1
jax: 0.10.0
libtpu: 0.0.40
codegen_flags: <defaults>
</compile_context>

<pallas_src>
import functools

import jax
import jax.numpy as jnp
import numpy as np
from jax.experimental import pallas as pl
from jax.experimental.pallas import tpu as pltpu


def _lsce_kernel(x_ref, tgt_ref, out_ref, *, smoothing, tile_n, n_total):
    """One grid step: (TN, C) logits + (TN, 1) targets -> one partial loss sum,
    written to [0, 0] of a lane-dense (1, 8, 128) output block (zeros elsewhere)."""
    i = pl.program_id(0)

    x = x_ref[...].astype(jnp.float32)          # (TN, C) f32 math
    tgt = tgt_ref[...]                          # (TN, 1) int32
    c = x.shape[-1]

    # numerically stable log-sum-exp along the class (lane) axis
    m = jnp.max(x, axis=-1, keepdims=True)                            # (TN, 1)
    shifted = x - m                                                   # (TN, C)
    lse = jnp.log(jnp.sum(jnp.exp(shifted), axis=-1, keepdims=True))  # (TN, 1)

    # fused NLL + smoothing term without materializing a (TN, C) weight matrix:
    #   loss_row = conf*(lse - shifted[tgt]) + smooth*(lse - mean(shifted))
    #            = lse - conf*shifted[tgt] - (smooth/C)*sum(shifted)
    confidence = jnp.float32(1.0 - smoothing)
    smooth_w = jnp.float32(smoothing / c)
    class_iota = jax.lax.broadcasted_iota(jnp.int32, x.shape, 1)
    sum_all = jnp.sum(shifted, axis=-1, keepdims=True)                # (TN, 1)
    sum_tgt = jnp.sum(jnp.where(class_iota == tgt, shifted, 0.0),
                      axis=-1, keepdims=True)                         # (TN, 1)
    row_loss = lse - confidence * sum_tgt - smooth_w * sum_all        # (TN, 1)

    # mask rows past N in the padded last tile (where() drops any garbage/NaN)
    row_idx = i * tile_n + jax.lax.broadcasted_iota(jnp.int32, (tile_n, 1), 0)
    row_loss = jnp.where(row_idx < n_total, row_loss, 0.0)

    partial = jnp.sum(row_loss)                 # raw partial sum (no /N here)
    rr = jax.lax.broadcasted_iota(jnp.int32, (8, 128), 0)
    cc = jax.lax.broadcasted_iota(jnp.int32, (8, 128), 1)
    out_ref[0] = jnp.where((rr == 0) & (cc == 0), partial, 0.0)


def _vmem_capacity_bytes():
    """Per-TensorCore VMEM capacity; conservative (v7x-sized) fallback."""
    try:
        cap = int(getattr(pltpu.get_tpu_info(), "vmem_capacity_bytes"))
        if cap > 0:
            return cap
    except Exception:
        pass
    return 64 * 1024 * 1024


def _choose_tile_n(n, c, itemsize, vmem_cap):
    """Largest sublane-multiple row tile whose true in-kernel VMEM footprint
    (2x double-buffered native-dtype input block + ~5 lane-padded (TN, C) f32
    intermediates) stays under ~1/3 of the chip's VMEM."""
    c_pad = max(128, ((c + 127) // 128) * 128)          # lane padding in VMEM
    per_row = 2 * c_pad * itemsize + 5 * c_pad * 4
    budget = vmem_cap // 3
    rows = budget // max(per_row, 1)
    rows = int(max(8, rows))
    rows = (rows // 8) * 8
    if rows >= n:
        return n          # one tile covers the whole batch (block == full dim)
    return rows


def label_smoothing_cross_entropy(x, target, smoothing=0.1, tile_n=None):
    """x: (N, C) float logits (any float dtype, e.g. bf16); target: (N,) ints.
    Returns the scalar mean label-smoothed cross-entropy (float32)."""
    n, c = x.shape
    vmem_cap = _vmem_capacity_bytes()
    two_core_chip = vmem_cap <= 64 * 1024 * 1024        # v7x-like: 2 TCs/chip

    if tile_n is None:
        tile_n = _choose_tile_n(n, c, jnp.dtype(x.dtype).itemsize, vmem_cap)
        if two_core_chip and n >= 16:
            # keep >= 2 tiles so the "parallel" axis feeds both TensorCores
            half = ((-(-n // 2)) + 7) // 8 * 8
            tile_n = min(tile_n, half)
    tile_n = min(int(tile_n), n)
    if tile_n != n and tile_n % 8 != 0:
        tile_n = max(8, (tile_n // 8) * 8)      # sublane multiple or full dim
    num_tiles = pl.cdiv(n, tile_n)

    # leave Mosaic headroom on 64 MiB chips; go bigger on 128 MiB chips
    vmem_limit = 48 * 1024 * 1024 if two_core_chip else 100 * 1024 * 1024

    tgt2d = target.astype(jnp.int32).reshape(n, 1)

    kernel = functools.partial(_lsce_kernel, smoothing=float(smoothing),
                               tile_n=int(tile_n), n_total=int(n))

    partials = pl.pallas_call(
        kernel,
        out_shape=jax.ShapeDtypeStruct((num_tiles, 8, 128), jnp.float32),
        grid=(num_tiles,),
        in_specs=[
            pl.BlockSpec((tile_n, c), lambda i: (i, 0)),   # logits tile
            pl.BlockSpec((tile_n, 1), lambda i: (i, 0)),   # target column
        ],
        out_specs=pl.BlockSpec((1, 8, 128), lambda i: (i, 0, 0)),
        compiler_params=pltpu.CompilerParams(
            dimension_semantics=("parallel",),
            vmem_limit_bytes=int(vmem_limit)),
    )(x, tgt2d)

    # each tile wrote its partial sum at [., 0, 0] and zeros elsewhere:
    # a dense full-array reduce is cheaper than a strided [:, 0, 0] gather.
    return jnp.sum(partials) / jnp.float32(n)


def _reference(x, target, smoothing=0.1):
    confidence = 1.0 - smoothing
    logprobs = jax.nn.log_softmax(x.astype(jnp.float32), axis=-1)
    nll = -jnp.take_along_axis(logprobs, target[:, None].astype(jnp.int32),
                               axis=-1)[:, 0]
    smooth = -jnp.mean(logprobs, axis=-1)
    return jnp.mean(confidence * nll + smoothing * smooth)


if __name__ == "__main__":
    key = jax.random.PRNGKey(0)

    # Test 1: small shape matching the module's toy usage (f32, auto tiling).
    k1, k2, k3, k4, k5, k6 = jax.random.split(key, 6)
    x1 = jax.random.normal(k1, (8, 32), dtype=jnp.float32)
    t1 = jax.random.randint(k2, (8,), 0, 32, dtype=jnp.int32)
    out1 = jax.block_until_ready(label_smoothing_cross_entropy(x1, t1, 0.1))
    ref1 = jax.block_until_ready(_reference(x1, t1, 0.1))
    assert np.allclose(np.asarray(out1), np.asarray(ref1),
                       rtol=1e-4, atol=1e-4), (out1, ref1)

    # Test 2: multi-tile grid with a ragged last tile (N=100, TN=16) and
    # lane-multiple class count (C=256) — exercises row masking + parallel axis.
    x2 = jax.random.normal(k3, (100, 256), dtype=jnp.float32)
    t2 = jax.random.randint(k4, (100,), 0, 256, dtype=jnp.int32)
    out2 = jax.block_until_ready(
        label_smoothing_cross_entropy(x2, t2, 0.1, tile_n=16))
    ref2 = jax.block_until_ready(_reference(x2, t2, 0.1))
    assert np.allclose(np.asarray(out2), np.asarray(ref2),
                       rtol=1e-4, atol=1e-4), (out2, ref2)

    # Test 3: bf16 logits streamed from HBM, f32 math in-kernel, auto tiling
    # (also exercises the >=2-tile split on 2-TensorCore chips).
    x3 = jax.random.normal(k5, (64, 128), dtype=jnp.float32).astype(jnp.bfloat16)
    t3 = jax.random.randint(k6, (64,), 0, 128, dtype=jnp.int32)
    out3 = jax.block_until_ready(label_smoothing_cross_entropy(x3, t3, 0.1))
    ref3 = jax.block_until_ready(_reference(x3, t3, 0.1))
    assert np.allclose(np.asarray(out3), np.asarray(ref3),
                       rtol=1e-4, atol=1e-4), (out3, ref3)

    print("KERNEL_OK")
</pallas_src>

<mosaic_0001>
module attributes {stable_mosaic.version = 11 : i64} {
  func.func @_lsce_kernel(%arg0: i32, %arg1: memref<8x32xf32, #tpu.memory_space<vmem>>, %arg2: memref<8x1xi32, #tpu.memory_space<vmem>>, %arg3: memref<1x8x128xf32, #tpu.memory_space<vmem>>) attributes {dimension_semantics = [#tpu.dimension_semantics<parallel>], iteration_bounds = array<i64: 1>, scalar_prefetch = 0 : i64, scratch_operands = 0 : i64, tpu.core_type = #tpu.core_type<tc>, window_params = [{transform_indices = @transform_0, window_bounds = array<i64: 8, 32>}, {transform_indices = @transform_1, window_bounds = array<i64: 8, 1>}, {transform_indices = @transform_2, window_bounds = array<i64: 1, 8, 128>}]} {
    %c0 = arith.constant 0 : index
    %c0_0 = arith.constant 0 : index
    %0 = vector.load %arg1[%c0, %c0_0] : memref<8x32xf32, #tpu.memory_space<vmem>>, vector<8x32xf32>
    %c0_1 = arith.constant 0 : index
    %c0_2 = arith.constant 0 : index
    %1 = vector.load %arg2[%c0_1, %c0_2] : memref<8x1xi32, #tpu.memory_space<vmem>>, vector<8x1xi32>
    %cst = arith.constant dense<0xFF800000> : vector<8xf32>
    %2 = vector.multi_reduction <maximumf>, %0, %cst [1] : vector<8x32xf32> to vector<8xf32>
    %3 = vector.shape_cast %2 : vector<8xf32> to vector<8x1xf32>
    %4 = vector.broadcast %3 : vector<8x1xf32> to vector<8x32xf32>
    %5 = arith.subf %0, %4 : vector<8x32xf32>
    %6 = math.exp %5 : vector<8x32xf32>
    %cst_3 = arith.constant dense<0.000000e+00> : vector<8xf32>
    %7 = vector.multi_reduction <add>, %6, %cst_3 [1] : vector<8x32xf32> to vector<8xf32>
    %8 = vector.shape_cast %7 : vector<8xf32> to vector<8x1xf32>
    %9 = math.log %8 : vector<8x1xf32>
    %10 = tpu.iota {dimensions = array<i32: 1>} : vector<8x32xi32>
    %cst_4 = arith.constant dense<0.000000e+00> : vector<8xf32>
    %11 = vector.multi_reduction <add>, %5, %cst_4 [1] : vector<8x32xf32> to vector<8xf32>
    %12 = vector.shape_cast %11 : vector<8xf32> to vector<8x1xf32>
    %13 = vector.broadcast %1 : vector<8x1xi32> to vector<8x32xi32>
    %14 = arith.cmpi eq, %10, %13 : vector<8x32xi32>
    %cst_5 = arith.constant 0.000000e+00 : f32
    %15 = vector.broadcast %cst_5 : f32 to vector<8x32xf32>
    %16 = arith.select %14, %5, %15 : vector<8x32xi1>, vector<8x32xf32>
    %cst_6 = arith.constant dense<0.000000e+00> : vector<8xf32>
    %17 = vector.multi_reduction <add>, %16, %cst_6 [1] : vector<8x32xf32> to vector<8xf32>
    %18 = vector.shape_cast %17 : vector<8xf32> to vector<8x1xf32>
    %cst_7 = arith.constant 0.899999976 : f32
    %19 = vector.broadcast %cst_7 : f32 to vector<8x1xf32>
    %20 = arith.mulf %19, %18 : vector<8x1xf32>
    %21 = arith.subf %9, %20 : vector<8x1xf32>
    %cst_8 = arith.constant 3.125000e-03 : f32
    %22 = vector.broadcast %cst_8 : f32 to vector<8x1xf32>
    %23 = arith.mulf %22, %12 : vector<8x1xf32>
    %24 = arith.subf %21, %23 : vector<8x1xf32>
    %c8_i32 = arith.constant 8 : i32
    %25 = arith.muli %arg0, %c8_i32 : i32
    %26 = tpu.iota {dimensions = array<i32: 0>} : vector<8x1xi32>
    %27 = vector.broadcast %25 : i32 to vector<8x1xi32>
    %28 = arith.addi %27, %26 : vector<8x1xi32>
    %c8_i32_9 = arith.constant 8 : i32
    %29 = vector.broadcast %c8_i32_9 : i32 to vector<8x1xi32>
    %30 = arith.cmpi slt, %28, %29 : vector<8x1xi32>
    %cst_10 = arith.constant 0.000000e+00 : f32
    %31 = vector.broadcast %cst_10 : f32 to vector<8x1xf32>
    %32 = arith.select %30, %24, %31 : vector<8x1xi1>, vector<8x1xf32>
    %33 = vector.shape_cast %32 : vector<8x1xf32> to vector<1x8x1xf32>
    %cst_11 = arith.constant dense<0.000000e+00> : vector<1xf32>
    %34 = vector.multi_reduction <add>, %33, %cst_11 [1, 2] : vector<1x8x1xf32> to vector<1xf32>
    %35 = vector.shape_cast %34 : vector<1xf32> to vector<1x1x1xf32>
    %36 = vector.extract %35[0, 0, 0] : f32 from vector<1x1x1xf32>
    %37 = tpu.iota {dimensions = array<i32: 0>} : vector<8x128xi32>
    %38 = tpu.iota {dimensions = array<i32: 1>} : vector<8x128xi32>
    %c0_i32 = arith.constant 0 : i32
    %39 = vector.broadcast %c0_i32 : i32 to vector<8x128xi32>
    %40 = arith.cmpi eq, %37, %39 : vector<8x128xi32>
    %c0_i32_12 = arith.constant 0 : i32
    %41 = vector.broadcast %c0_i32_12 : i32 to vector<8x128xi32>
    %42 = arith.cmpi eq, %38, %41 : vector<8x128xi32>
    %43 = arith.andi %40, %42 : vector<8x128xi1>
    %cst_13 = arith.constant 0.000000e+00 : f32
    %44 = vector.broadcast %36 : f32 to vector<8x128xf32>
    %45 = vector.broadcast %cst_13 : f32 to vector<8x128xf32>
    %46 = arith.select %43, %44, %45 : vector<8x128xi1>, vector<8x128xf32>
    %c0_14 = arith.constant 0 : index
    %c0_15 = arith.constant 0 : index
    %c0_16 = arith.constant 0 : index
    %47 = vector.load %arg3[%c0_14, %c0_15, %c0_16] : memref<1x8x128xf32, #tpu.memory_space<vmem>>, vector<1x8x128xf32>
    %48 = vector.shape_cast %47 : vector<1x8x128xf32> to vector<8x128xf32>
    %49 = vector.shape_cast %46 : vector<8x128xf32> to vector<1x8x128xf32>
    tpu.vector_store %arg3[%c0_14, %c0_15, %c0_16], %49 {strides = array<i32>} : memref<1x8x128xf32, #tpu.memory_space<vmem>>, vector<1x8x128xf32>,
    return
  }
  func.func @transform_0(%arg0: i32) -> (i32, i32) {
    %c0_i32 = arith.constant 0 : i32
    %c0_i32_0 = arith.constant 0 : i32
    return %arg0, %c0_i32 : i32, i32
  }
  func.func @transform_1(%arg0: i32) -> (i32, i32) {
    %c0_i32 = arith.constant 0 : i32
    %c0_i32_0 = arith.constant 0 : i32
    return %arg0, %c0_i32 : i32, i32
  }
  func.func @transform_2(%arg0: i32) -> (i32, i32, i32) {
    %c0_i32 = arith.constant 0 : i32
    %c0_i32_0 = arith.constant 0 : i32
    %c0_i32_1 = arith.constant 0 : i32
    return %arg0, %c0_i32, %c0_i32_0 : i32, i32, i32
  }
}

</mosaic_0001>

<bundles_post_ra>
// kernel: tpu_custom_call.1
= control target key start
LH: loop header
LB: loop body
LE: loop exit
PB: predicated region body
PF: predicated region fallthrough
CT: control target
= control target key end

     0   :  { %vm14_vm0 = vcmask 261120   ;;  %s153_s0 = inlined_call_operand.vmem [shape: f32[8,32], index: 0, kind: input, shape index: {}]   ;;  %s154_s1 = inlined_call_operand.vmem [shape: s32[8,1], index: 1, kind: input, shape index: {}]   ;;  %s155_s2 = inlined_call_operand.hbm [shape: f32[1,8,128], index: 2, kind: output, shape index: {}]  }
   0x1   :  { %v12_v0 = vld [vmem:[%s153_s0] sm:$0xff] }
   0x2   :  { %7 = vsyncpa [#allocation3], 0  ;;  %v15_v1 = vsel %vm14_vm0, %v12_v0, -inf  ;;  %v114_v2 = vmov 0   ;;  %v13_v3 = vld [vmem:[%s154_s1] sm:$0xff]  ;;  %v26_v7 = vlaneseq  ;;  %vm50_vm2 = vcmask 7168  }
   0x3   :  { %85 = vset.pattern.permute.xlu0 %v114_v2  ;;  %s115_s0 = smov [#allocation2]  }
   0x4   :  { %16 = vmax.xlane.f32.xlu0 %v15_v1  ;;  %v27_v8 = vand.u32 127, %v26_v7  ;;  %v45_v32 = vshrl.u32 %v26_v7, 7  ;;  %s73_s1 = sshll.u32 %s115_s0, 4  ;;  %s74_s1 = int_to_ptr.vmem [resolvable:$true] %s73_s1 }
   0x5   :  { %s90_s14 = scalar_lea.vmem %s74_s1, 128  ;;  %p95_p1 = scmp.lt.s32.totalorder %s74_s1, %s74_s1 }
   0x6   :  { %vm61_vm3 = vcmp.eq.s32.totalorder %v45_v32, 0  ;;  %vm62_vm4 = vcmp.eq.s32.totalorder %v27_v8, 0  ;;  %p91_p0 = scmp.ne.s32.totalorder %s74_s1, %s90_s14  ;;  %p96_p2 = scmp.lt.s32.totalorder %s90_s14, %s90_s14 }
   0x7   :  { %vm63_vm5 = vmand %vm61_vm3, %vm62_vm4 }
   0x8   :  { %p97_p3 = por %p96_p2, %p95_p1 }
   0xa   :  { %p98_p4 = pnand %p97_p3, %p91_p0 }
  0x1a   :  { %32 = vperm.xlu0 %85, %v13_v3  }
  0x91   :  { %v17_v4 = vpop.xlane.xlu0 %16 }
  0x92   :  { %v18_v5 = vsub.f32 %v12_v0, %v17_v4 }
  0x94   :  { %v19_v6 = vmul.f32 1.442695, %v18_v5  ;;  %v28_v14 = vsel %vm14_vm0, %v18_v5, 0.0 }
  0x96   :  { %86 = vpow2.f32 %v19_v6 }
  0x99   :  { %v33_v9 = vpop.permute.xlu0 %32 }
  0x9a   :  { %vm34_vm1 = vcmp.eq.s32.totalorder %v27_v8, %v33_v9 }
  0x9b   :  { %v35_v12 = vsel %vm34_vm1, %v18_v5, 0.0 }
  0x9c   :  { %v36_v13 = vsel %vm14_vm0, %v35_v12, 0.0 }
  0xa0   :  { %v87_v10 = vpop.eup %86 }
  0xa1   :  { %v21_v11 = vsel %vm14_vm0, %v87_v10, 0.0 }
  0xa2   :  { %22 = vadd.xlane.f32.xlu1 %v21_v11 }
  0xa6   :  { %37 = vadd.xlane.f32.xlu1 %v36_v13 }
  0xaa   :  { %29 = vadd.xlane.f32.xlu1 %v28_v14 }
 0x12f   :  { %v23_v15 = vpop.xlane.xlu1 %22 }
 0x130   :  { %88 = vlog2.f32 %v23_v15 }
 0x133   :  { %v38_v16 = vpop.xlane.xlu1 %37 }
 0x134   :  { %v39_v20 = vmul.f32 0.9, %v38_v16 }
 0x137   :  { %v30_v18 = vpop.xlane.xlu1 %29 }
 0x138   :  { %v41_v22 = vmul.f32 0.003125, %v30_v18 }
 0x13a   :  { %v89_v17 = vpop.eup %88 }
 0x13b   :  { %v25_v19 = vmul.f32 0.6931472, %v89_v17 }
 0x13d   :  { %v40_v21 = vsub.f32 %v25_v19, %v39_v20 }
 0x13f   :  { %v42_v23 = vsub.f32 %v40_v21, %v41_v22 }
 0x141   :  { %v51_v24 = vsel %vm50_vm2, %v42_v23, 0.0 }
 0x142   :  { %52 = vadd.xlane.f32.xlu1 %v51_v24 }
 0x1cf   :  { %v53_v25 = vpop.xlane.xlu1 %52 }
 0x1d0   :  { %v54_v26 = vrot.slane %v53_v25, 4 }
 0x1d2   :  { %v55_v27 = vadd.f32 %v54_v26, %v53_v25 }
 0x1d4   :  { %v56_v28 = vrot.slane %v55_v27, 2 }
 0x1d6   :  { %v57_v29 = vadd.f32 %v56_v28, %v55_v27 }
 0x1d8   :  { %v58_v30 = vrot.slane %v57_v29, 1 }
 0x1da   :  { %v59_v31 = vadd.f32 %v58_v30, %v57_v29 }
 0x1dc   :  { %81 = vpush %v59_v31 }
 0x20d   :  { %s82_s13 = spop %81 }
 0x20e   :  { %v64_v33 = vstv %s82_s13 }
 0x20f   :  { %v65_v34 = vsel %vm63_vm5, %v64_v33, 0.0 }
 0x210   :  { %66 = vst [vmem:[#allocation2] sm:$0xff] %v65_v34 }
 0x211   :  { %101 = shalt.err (!%p98_p4)
}
 0x212   :  { %s102_s17 = scalar_lea.hbm %s155_s2, 128 }
 0x213   :  { %p103_p5 = scmp.ne.s32.totalorder %s155_s2, %s102_s17  ;;  %p106_p6 = scmp.lt.u32.totalorder %s102_s17, %s155_s2 }
 0x215   :  { %p108_p7 = pnand %p106_p6, %p103_p5 }
 0x217   :  { %111 = shalt.err (!%p108_p7)
}
 0x218   :  { %76 = dma.vmem_to_hbm [thread:$0]  %s74_s1, 128, %s155_s2, [#allocation3]  }
 0x219   :  { %112 = dma.done.wait [#allocation3], 128  }
 0x21a   :  { %113 = vsyncadd [#allocation3], 4294967168 }
 0x21b   :  { %80 = vsyncpa [#allocation3], 1 }

</bundles_post_ra>
